<compile_context>
chip_gen: v7x
topology: tpu7x:2x2x1
jax: 0.10.0
libtpu: 0.0.40
codegen_flags: <defaults>
</compile_context>

<pallas_src>
import functools

import jax
import jax.numpy as jnp
import numpy as np
from jax.experimental import pallas as pl
from jax.experimental.pallas import tpu as pltpu


def _lane_shift_left(v, amt):
    """v'[..., i] = v[..., (i + amt) mod n]  (callers only read safe lanes)."""
    n = v.shape[-1]
    return pltpu.roll(v, (n - amt) % n, axis=len(v.shape) - 1)


def _teca_kernel(H, W, K,
                 x_ref, wcat_ref, ravg_ref, pick_ref, w02e_ref,
                 bns_ref, bnb_ref, mh_ref, mw_ref, tblk_ref, out_ref):
    x = x_ref[...]                                        # (C, B*H*W) f32

    # ---- directional average pooling, folded into one matmul ---------------
    A = jnp.dot(x, ravg_ref[...], preferred_element_type=jnp.float32)   # (C, B*(H+W))

    # ---- directional max pooling: log-trees of lane rolls (XLU) -------------
    # max over each aligned group of W lanes -> result at the group's 1st lane
    mc = x
    step = 1
    while step < W:
        mc = jnp.maximum(mc, _lane_shift_left(mc, step))
        step *= 2
    # max over stride-W lanes -> result at lanes 0..W-1 of each batch block
    mr = x
    step = 1
    while step < H:
        mr = jnp.maximum(mr, _lane_shift_left(mr, step * W))
        step *= 2
    mcat = jnp.concatenate([mc, mr], axis=1)              # (C, 2*B*H*W)
    M = jnp.dot(mcat, pick_ref[...], preferred_element_type=jnp.float32)  # (C, B*(H+W))

    # ---- conv01: single accumulating matmul (both branches, both batches) --
    scat = jnp.concatenate([A, M], axis=0)                # (2C, B*(H+W))
    y = jnp.dot(wcat_ref[...], scat, preferred_element_type=jnp.float32)  # (C, B*(H+W))

    # ---- conv02: depthwise 1D conv (k=K) via lane rolls + pre-masked weights
    pad = K // 2
    n = y.shape[-1]
    z = y * w02e_ref[pad]                                 # center tap (d = 0)
    for k in range(K):
        d = k - pad
        if d == 0:
            continue
        z = z + _lane_shift_left(y, d % n) * w02e_ref[k]

    # ---- folded BatchNorm (inference) + h_swish + sigmoid gates -------------
    z = z * bns_ref[...] + bnb_ref[...]
    z = z * jnp.clip(z + 3.0, 0.0, 6.0) * (1.0 / 6.0)
    g = jax.nn.sigmoid(z)                                 # (C, B*(H+W))

    # ---- expand a_h / a_w gates to (C, B*H*W) with 0/1 selection matmuls ----
    gh = jnp.dot(g, mh_ref[...], preferred_element_type=jnp.float32)   # (C, B*H*W)
    gw = jnp.dot(g, mw_ref[...], preferred_element_type=jnp.float32)   # (C, B*H*W)

    # ---- spatial attention: channel max/mean -> Toeplitz matmul -> sigmoid --
    pmax = jnp.max(x, axis=0, keepdims=True)              # (1, B*H*W)
    pmean = jnp.mean(x, axis=0, keepdims=True)            # (1, B*H*W)
    prow = jnp.concatenate([pmax, pmean], axis=1)         # (1, 2*B*H*W)
    s_att = jax.nn.sigmoid(
        jnp.dot(prow, tblk_ref[...], preferred_element_type=jnp.float32))  # (1, B*H*W)

    # ---- fused gate product + single lane-dense (unmasked) store ------------
    out_ref[...] = (x * (gh * gw * s_att)).astype(out_ref.dtype)


def _build_constants(B, C, H, W, K, w0, w1, w02, wsa):
    """Weight/shape-only preprocessing (done once, like the BN fold)."""
    L = H + W
    HW = H * W
    pad = K // 2
    f32 = np.float32

    # conv01 fused weight: [w0 | w1]  (C, 2C); w0 acts on avg, w1 on max.
    wcat = jnp.concatenate([w0, w1], axis=1)

    ravg = np.zeros((B * HW, B * L), f32)        # avg-pool matmul matrix
    pick = np.zeros((2 * B * HW, B * L), f32)    # compaction of roll-tree maxes
    mh = np.zeros((B * L, B * HW), f32)          # a_h expansion selector
    mw = np.zeros((B * L, B * HW), f32)          # a_w expansion selector
    for b in range(B):
        for h in range(H):
            for w in range(W):
                src = b * HW + h * W + w
                ravg[src, b * L + h] = 1.0 / W           # mean over W at row h
                ravg[src, b * L + H + w] = 1.0 / H       # mean over H at col w
                mh[b * L + h, src] = 1.0
                mw[b * L + H + w, src] = 1.0
        for h in range(H):
            pick[b * HW + h * W, b * L + h] = 1.0        # max-over-W result lane
        for w in range(W):
            pick[B * HW + b * HW + w, b * L + H + w] = 1.0  # max-over-H result lane

    # depthwise conv02 weights with the per-batch zero-padding mask folded in:
    #   w02_eff[k, c, col] = w02[c, k] * [0 <= (col % L) + k - pad < L]
    cols = np.arange(B * L)
    cin = cols % L
    mask = np.stack([((cin + (k - pad) >= 0) & (cin + (k - pad) < L))
                     for k in range(K)]).astype(f32)      # (K, B*L)
    w02_eff = w02.T[:, :, None] * jnp.asarray(mask)[:, None, :]  # (K, C, B*L)

    # 7x7 spatial-attention conv as one Toeplitz matmul:
    #   s[b, i*W+j] = sum_{ch,h',w'} wsa[ch, h'-i+pad, w'-j+pad] * pool[ch,b,h',w']
    src_h = (np.arange(HW) // W)[:, None]
    src_w = (np.arange(HW) % W)[:, None]
    dst_h = (np.arange(HW) // W)[None, :]
    dst_w = (np.arange(HW) % W)[None, :]
    ki = src_h - dst_h + pad
    kj = src_w - dst_w + pad
    valid = (ki >= 0) & (ki < K) & (kj >= 0) & (kj < K)
    ki_c = np.clip(ki, 0, K - 1)
    kj_c = np.clip(kj, 0, K - 1)
    zero = jnp.zeros((HW, HW), jnp.float32)

    def toeplitz(ch):
        t = jnp.where(jnp.asarray(valid), wsa[ch, ki_c, kj_c], 0.0)   # (HW, HW)
        rows = []
        for b in range(B):                                            # block-diag over batch
            rows.append(jnp.concatenate(
                [t if bb == b else zero for bb in range(B)], axis=1))
        return jnp.concatenate(rows, axis=0)                          # (B*HW, B*HW)

    tblk = jnp.concatenate([toeplitz(0), toeplitz(1)], axis=0)        # (2*B*HW, B*HW)

    return (wcat, jnp.asarray(ravg), jnp.asarray(pick), w02_eff,
            jnp.asarray(mh), jnp.asarray(mw), tblk)


def myteca_forward(x, w0, w1, w02, bn_scale, bn_bias, wsa, kernel_size=7):
    B, C, H, W = x.shape
    assert H & (H - 1) == 0 and W & (W - 1) == 0, "roll-tree pooling needs pow2 H, W"
    K = kernel_size

    wcat, ravg, pick, w02_eff, mh, mw, tblk = _build_constants(
        B, C, H, W, K, w0, w1, w02, wsa)

    # Lane-dense layout: channels -> sublanes, (batch, h, w) -> lanes.
    x_perm = jnp.transpose(x, (1, 0, 2, 3)).reshape(C, B * H * W)

    vmem = lambda: pl.BlockSpec(memory_space=pltpu.MemorySpace.VMEM)
    out_flat = pl.pallas_call(
        functools.partial(_teca_kernel, H, W, K),
        out_shape=jax.ShapeDtypeStruct((C, B * H * W), x.dtype),
        in_specs=[vmem() for _ in range(10)],
        out_specs=vmem(),
    )(x_perm, wcat, ravg, pick, w02_eff, bn_scale, bn_bias, mh, mw, tblk)

    return out_flat.reshape(C, B, H, W).transpose(1, 0, 2, 3)


def myteca_reference(x, w0, w1, w02, bn_scale, bn_bias, wsa):
    """Pure-JAX reference (mirrors the PyTorch forward)."""
    b, c, h, w = x.shape
    K, PAD, L = 7, 3, h + w
    A = jnp.concatenate([x.mean(3), x.mean(2)], axis=2)           # (b,c,L)
    M = jnp.concatenate([x.max(3), x.max(2)], axis=2)
    hp = jax.lax.Precision.HIGHEST
    y = (jnp.einsum('oc,bcl->bol', w0, A, precision=hp)
         + jnp.einsum('oc,bcl->bol', w1, M, precision=hp))
    ypad = jnp.pad(y, ((0, 0), (0, 0), (PAD, PAD)))
    z = sum(w02[None, :, k:k + 1] * ypad[:, :, k:k + L] for k in range(K))
    z = z * bn_scale.reshape(1, c, 1) + bn_bias.reshape(1, c, 1)
    z = z * jnp.clip(z + 3.0, 0.0, 6.0) / 6.0
    a_h = jax.nn.sigmoid(z[:, :, :h])                             # (b,c,h)
    a_w = jax.nn.sigmoid(z[:, :, h:])                             # (b,c,w)
    P = jnp.stack([x.max(1), x.mean(1)], axis=1)                  # (b,2,h,w)
    Ppad = jnp.pad(P, ((0, 0), (0, 0), (PAD, PAD), (PAD, PAD)))
    s = jnp.zeros((b, h, w), x.dtype)
    for ch in range(2):
        for ki in range(K):
            for kj in range(K):
                s = s + wsa[ch, ki, kj] * Ppad[:, ch, ki:ki + h, kj:kj + w]
    s = jax.nn.sigmoid(s)
    return x * a_h[..., None] * a_w[:, :, None, :] * s[:, None]


if __name__ == "__main__":
    # Module constants: inp = oup = 32, reduction = 16, kernel_size = 7.
    b, c, h, w = 2, 32, 8, 8

    key = jax.random.PRNGKey(0)
    ks = jax.random.split(key, 8)

    x = jax.random.normal(ks[0], (b, c, h, w), jnp.float32)

    # conv01: Conv2d(inp, inp, kernel=(1,2), bias=False) -> weight (c, c, 1, 2)
    w01 = jax.random.normal(ks[1], (c, c, 1, 2), jnp.float32) * 0.1
    w0 = w01[:, :, 0, 0]
    w1 = w01[:, :, 0, 1]

    # conv02: Conv1d(inp, inp, k=7, groups=inp, bias=False) -> weight (c, 1, 7)
    w02 = jax.random.normal(ks[2], (c, 1, 7), jnp.float32).reshape(c, 7) * 0.2

    # BatchNorm2d(inp), inference mode: fold into per-channel scale/bias
    gamma = 1.0 + 0.1 * jax.random.normal(ks[3], (c,), jnp.float32)
    beta = 0.1 * jax.random.normal(ks[4], (c,), jnp.float32)
    rmean = 0.1 * jax.random.normal(ks[5], (c,), jnp.float32)
    rvar = jax.random.uniform(ks[6], (c,), jnp.float32, minval=0.5, maxval=1.5)
    inv_std = gamma / jnp.sqrt(rvar + 1e-5)
    bn_scale = inv_std.reshape(c, 1)
    bn_bias = (beta - rmean * inv_std).reshape(c, 1)

    # spacial_attention conv: Conv2d(2, 1, 7, padding=3, bias=False) -> (1,2,7,7)
    wsa = jax.random.normal(ks[7], (1, 2, 7, 7), jnp.float32)[0] * 0.1   # (2,7,7)

    out = myteca_forward(x, w0, w1, w02, bn_scale, bn_bias, wsa)
    out = jax.block_until_ready(out)

    ref = jax.block_until_ready(
        myteca_reference(x, w0, w1, w02, bn_scale, bn_bias, wsa))

    assert out.shape == (b, c, h, w) and out.dtype == jnp.float32
    max_err = float(jnp.max(jnp.abs(out - ref)))
    assert jnp.allclose(out, ref, rtol=1e-2, atol=1e-2), max_err

    print("KERNEL_OK")
</pallas_src>

<mosaic_0001>
module attributes {stable_mosaic.version = 11 : i64} {
  func.func @_teca_kernel(%arg0: memref<32x128xf32, #tpu.memory_space<vmem>>, %arg1: memref<32x64xf32, #tpu.memory_space<vmem>>, %arg2: memref<128x32xf32, #tpu.memory_space<vmem>>, %arg3: memref<256x32xf32, #tpu.memory_space<vmem>>, %arg4: memref<7x32x32xf32, #tpu.memory_space<vmem>>, %arg5: memref<32x1xf32, #tpu.memory_space<vmem>>, %arg6: memref<32x1xf32, #tpu.memory_space<vmem>>, %arg7: memref<32x128xf32, #tpu.memory_space<vmem>>, %arg8: memref<32x128xf32, #tpu.memory_space<vmem>>, %arg9: memref<256x128xf32, #tpu.memory_space<vmem>>, %arg10: memref<32x128xf32, #tpu.memory_space<vmem>>) attributes {dimension_semantics = [], scalar_prefetch = 0 : i64, scratch_operands = 0 : i64, tpu.core_type = #tpu.core_type<tc>} {
    %c0 = arith.constant 0 : index
    %c0_0 = arith.constant 0 : index
    %0 = vector.load %arg0[%c0, %c0_0] : memref<32x128xf32, #tpu.memory_space<vmem>>, vector<32x128xf32>
    %c0_1 = arith.constant 0 : index
    %c0_2 = arith.constant 0 : index
    %1 = vector.load %arg2[%c0_1, %c0_2] : memref<128x32xf32, #tpu.memory_space<vmem>>, vector<128x32xf32>
    %cst = arith.constant dense<0.000000e+00> : vector<32x32xf32>
    %2 = tpu.matmul %0, %1, %cst {dimension_numbers = #tpu.dot_dimension_numbers<[1], [0], [0], [1], [0, 0, 1, 1], [], []>} : vector<32x128xf32>, vector<128x32xf32>, vector<32x32xf32> -> vector<32x32xf32>
    %c127_i32 = arith.constant 127 : i32
    %3 = tpu.dynamic_rotate %0 by %c127_i32 dim 1 : vector<32x128xf32>, i32 -> vector<32x128xf32>
    %4 = arith.maximumf %0, %3 : vector<32x128xf32>
    %c126_i32 = arith.constant 126 : i32
    %5 = tpu.dynamic_rotate %4 by %c126_i32 dim 1 : vector<32x128xf32>, i32 -> vector<32x128xf32>
    %6 = arith.maximumf %4, %5 : vector<32x128xf32>
    %c124_i32 = arith.constant 124 : i32
    %7 = tpu.dynamic_rotate %6 by %c124_i32 dim 1 : vector<32x128xf32>, i32 -> vector<32x128xf32>
    %8 = arith.maximumf %6, %7 : vector<32x128xf32>
    %c120_i32 = arith.constant 120 : i32
    %9 = tpu.dynamic_rotate %0 by %c120_i32 dim 1 : vector<32x128xf32>, i32 -> vector<32x128xf32>
    %10 = arith.maximumf %0, %9 : vector<32x128xf32>
    %c112_i32 = arith.constant 112 : i32
    %11 = tpu.dynamic_rotate %10 by %c112_i32 dim 1 : vector<32x128xf32>, i32 -> vector<32x128xf32>
    %12 = arith.maximumf %10, %11 : vector<32x128xf32>
    %c96_i32 = arith.constant 96 : i32
    %13 = tpu.dynamic_rotate %12 by %c96_i32 dim 1 : vector<32x128xf32>, i32 -> vector<32x128xf32>
    %14 = arith.maximumf %12, %13 : vector<32x128xf32>
    %15 = tpu.concatenate %8, %14 in 1 : vector<32x128xf32>, vector<32x128xf32> -> vector<32x256xf32>
    %c0_3 = arith.constant 0 : index
    %c0_4 = arith.constant 0 : index
    %16 = vector.load %arg3[%c0_3, %c0_4] : memref<256x32xf32, #tpu.memory_space<vmem>>, vector<256x32xf32>
    %cst_5 = arith.constant dense<0.000000e+00> : vector<32x32xf32>
    %17 = tpu.matmul %15, %16, %cst_5 {dimension_numbers = #tpu.dot_dimension_numbers<[1], [0], [0], [1], [0, 0, 1, 1], [], []>} : vector<32x256xf32>, vector<256x32xf32>, vector<32x32xf32> -> vector<32x32xf32>
    %18 = tpu.concatenate %2, %17 in 0 : vector<32x32xf32>, vector<32x32xf32> -> vector<64x32xf32>
    %c0_6 = arith.constant 0 : index
    %c0_7 = arith.constant 0 : index
    %19 = vector.load %arg1[%c0_6, %c0_7] : memref<32x64xf32, #tpu.memory_space<vmem>>, vector<32x64xf32>
    %cst_8 = arith.constant dense<0.000000e+00> : vector<32x32xf32>
    %20 = tpu.matmul %19, %18, %cst_8 {dimension_numbers = #tpu.dot_dimension_numbers<[1], [0], [0], [1], [0, 0, 1, 1], [], []>} : vector<32x64xf32>, vector<64x32xf32>, vector<32x32xf32> -> vector<32x32xf32>
    %c3 = arith.constant 3 : index
    %c0_9 = arith.constant 0 : index
    %c0_10 = arith.constant 0 : index
    %21 = vector.load %arg4[%c3, %c0_9, %c0_10] : memref<7x32x32xf32, #tpu.memory_space<vmem>>, vector<1x32x32xf32>
    %22 = vector.shape_cast %21 : vector<1x32x32xf32> to vector<32x32xf32>
    %23 = arith.mulf %20, %22 : vector<32x32xf32>
    %c3_i32 = arith.constant 3 : i32
    %24 = tpu.dynamic_rotate %20 by %c3_i32 dim 1 : vector<32x32xf32>, i32 -> vector<32x32xf32>
    %c0_11 = arith.constant 0 : index
    %c0_12 = arith.constant 0 : index
    %c0_13 = arith.constant 0 : index
    %25 = vector.load %arg4[%c0_11, %c0_12, %c0_13] : memref<7x32x32xf32, #tpu.memory_space<vmem>>, vector<1x32x32xf32>
    %26 = vector.shape_cast %25 : vector<1x32x32xf32> to vector<32x32xf32>
    %27 = arith.mulf %24, %26 : vector<32x32xf32>
    %28 = arith.addf %23, %27 : vector<32x32xf32>
    %c2_i32 = arith.constant 2 : i32
    %29 = tpu.dynamic_rotate %20 by %c2_i32 dim 1 : vector<32x32xf32>, i32 -> vector<32x32xf32>
    %c1 = arith.constant 1 : index
    %c0_14 = arith.constant 0 : index
    %c0_15 = arith.constant 0 : index
    %30 = vector.load %arg4[%c1, %c0_14, %c0_15] : memref<7x32x32xf32, #tpu.memory_space<vmem>>, vector<1x32x32xf32>
    %31 = vector.shape_cast %30 : vector<1x32x32xf32> to vector<32x32xf32>
    %32 = arith.mulf %29, %31 : vector<32x32xf32>
    %33 = arith.addf %28, %32 : vector<32x32xf32>
    %c1_i32 = arith.constant 1 : i32
    %34 = tpu.dynamic_rotate %20 by %c1_i32 dim 1 : vector<32x32xf32>, i32 -> vector<32x32xf32>
    %c2 = arith.constant 2 : index
    %c0_16 = arith.constant 0 : index
    %c0_17 = arith.constant 0 : index
    %35 = vector.load %arg4[%c2, %c0_16, %c0_17] : memref<7x32x32xf32, #tpu.memory_space<vmem>>, vector<1x32x32xf32>
    %36 = vector.shape_cast %35 : vector<1x32x32xf32> to vector<32x32xf32>
    %37 = arith.mulf %34, %36 : vector<32x32xf32>
    %38 = arith.addf %33, %37 : vector<32x32xf32>
    %c31_i32 = arith.constant 31 : i32
    %39 = tpu.dynamic_rotate %20 by %c31_i32 dim 1 : vector<32x32xf32>, i32 -> vector<32x32xf32>
    %c4 = arith.constant 4 : index
    %c0_18 = arith.constant 0 : index
    %c0_19 = arith.constant 0 : index
    %40 = vector.load %arg4[%c4, %c0_18, %c0_19] : memref<7x32x32xf32, #tpu.memory_space<vmem>>, vector<1x32x32xf32>
    %41 = vector.shape_cast %40 : vector<1x32x32xf32> to vector<32x32xf32>
    %42 = arith.mulf %39, %41 : vector<32x32xf32>
    %43 = arith.addf %38, %42 : vector<32x32xf32>
    %c30_i32 = arith.constant 30 : i32
    %44 = tpu.dynamic_rotate %20 by %c30_i32 dim 1 : vector<32x32xf32>, i32 -> vector<32x32xf32>
    %c5 = arith.constant 5 : index
    %c0_20 = arith.constant 0 : index
    %c0_21 = arith.constant 0 : index
    %45 = vector.load %arg4[%c5, %c0_20, %c0_21] : memref<7x32x32xf32, #tpu.memory_space<vmem>>, vector<1x32x32xf32>
    %46 = vector.shape_cast %45 : vector<1x32x32xf32> to vector<32x32xf32>
    %47 = arith.mulf %44, %46 : vector<32x32xf32>
    %48 = arith.addf %43, %47 : vector<32x32xf32>
    %c29_i32 = arith.constant 29 : i32
    %49 = tpu.dynamic_rotate %20 by %c29_i32 dim 1 : vector<32x32xf32>, i32 -> vector<32x32xf32>
    %c6 = arith.constant 6 : index
    %c0_22 = arith.constant 0 : index
    %c0_23 = arith.constant 0 : index
    %50 = vector.load %arg4[%c6, %c0_22, %c0_23] : memref<7x32x32xf32, #tpu.memory_space<vmem>>, vector<1x32x32xf32>
    %51 = vector.shape_cast %50 : vector<1x32x32xf32> to vector<32x32xf32>
    %52 = arith.mulf %49, %51 : vector<32x32xf32>
    %53 = arith.addf %48, %52 : vector<32x32xf32>
    %c0_24 = arith.constant 0 : index
    %c0_25 = arith.constant 0 : index
    %54 = vector.load %arg5[%c0_24, %c0_25] : memref<32x1xf32, #tpu.memory_space<vmem>>, vector<32x1xf32>
    %55 = vector.broadcast %54 : vector<32x1xf32> to vector<32x32xf32>
    %56 = arith.mulf %53, %55 : vector<32x32xf32>
    %c0_26 = arith.constant 0 : index
    %c0_27 = arith.constant 0 : index
    %57 = vector.load %arg6[%c0_26, %c0_27] : memref<32x1xf32, #tpu.memory_space<vmem>>, vector<32x1xf32>
    %58 = vector.broadcast %57 : vector<32x1xf32> to vector<32x32xf32>
    %59 = arith.addf %56, %58 : vector<32x32xf32>
    %cst_28 = arith.constant 3.000000e+00 : f32
    %60 = vector.broadcast %cst_28 : f32 to vector<32x32xf32>
    %61 = arith.addf %59, %60 : vector<32x32xf32>
    %cst_29 = arith.constant 0.000000e+00 : f32
    %cst_30 = arith.constant 6.000000e+00 : f32
    %62 = vector.broadcast %cst_29 : f32 to vector<32x32xf32>
    %63 = arith.maximumf %62, %61 : vector<32x32xf32>
    %64 = vector.broadcast %cst_30 : f32 to vector<32x32xf32>
    %65 = arith.minimumf %64, %63 : vector<32x32xf32>
    %66 = arith.mulf %59, %65 : vector<32x32xf32>
    %cst_31 = arith.constant 0.166666672 : f32
    %67 = vector.broadcast %cst_31 : f32 to vector<32x32xf32>
    %68 = arith.mulf %66, %67 : vector<32x32xf32>
    %69 = arith.negf %68 : vector<32x32xf32>
    %70 = math.exp %69 : vector<32x32xf32>
    %cst_32 = arith.constant 1.000000e+00 : f32
    %71 = vector.broadcast %cst_32 : f32 to vector<32x32xf32>
    %72 = arith.addf %71, %70 : vector<32x32xf32>
    %73 = arith.divf %71, %72 : vector<32x32xf32>
    %c0_33 = arith.constant 0 : index
    %c0_34 = arith.constant 0 : index
    %74 = vector.load %arg7[%c0_33, %c0_34] : memref<32x128xf32, #tpu.memory_space<vmem>>, vector<32x128xf32>
    %cst_35 = arith.constant dense<0.000000e+00> : vector<32x128xf32>
    %75 = tpu.matmul %73, %74, %cst_35 {dimension_numbers = #tpu.dot_dimension_numbers<[1], [0], [0], [1], [0, 0, 1, 1], [], []>} : vector<32x32xf32>, vector<32x128xf32>, vector<32x128xf32> -> vector<32x128xf32>
    %c0_36 = arith.constant 0 : index
    %c0_37 = arith.constant 0 : index
    %76 = vector.load %arg8[%c0_36, %c0_37] : memref<32x128xf32, #tpu.memory_space<vmem>>, vector<32x128xf32>
    %cst_38 = arith.constant dense<0.000000e+00> : vector<32x128xf32>
    %77 = tpu.matmul %73, %76, %cst_38 {dimension_numbers = #tpu.dot_dimension_numbers<[1], [0], [0], [1], [0, 0, 1, 1], [], []>} : vector<32x32xf32>, vector<32x128xf32>, vector<32x128xf32> -> vector<32x128xf32>
    %cst_39 = arith.constant dense<0xFF800000> : vector<128xf32>
    %78 = vector.multi_reduction <maximumf>, %0, %cst_39 [0] : vector<32x128xf32> to vector<128xf32>
    %79 = vector.shape_cast %78 : vector<128xf32> to vector<1x128xf32>
    %cst_40 = arith.constant dense<0.000000e+00> : vector<128xf32>
    %80 = vector.multi_reduction <add>, %0, %cst_40 [0] : vector<32x128xf32> to vector<128xf32>
    %81 = vector.shape_cast %80 : vector<128xf32> to vector<1x128xf32>
    %cst_41 = arith.constant 3.200000e+01 : f32
    %82 = vector.broadcast %cst_41 : f32 to vector<1x128xf32>
    %83 = arith.divf %81, %82 : vector<1x128xf32>
    %84 = tpu.concatenate %79, %83 in 1 : vector<1x128xf32>, vector<1x128xf32> -> vector<1x256xf32>
    %c0_42 = arith.constant 0 : index
    %c0_43 = arith.constant 0 : index
    %85 = vector.load %arg9[%c0_42, %c0_43] : memref<256x128xf32, #tpu.memory_space<vmem>>, vector<256x128xf32>
    %cst_44 = arith.constant dense<0.000000e+00> : vector<1x128xf32>
    %86 = tpu.matmul %84, %85, %cst_44 {dimension_numbers = #tpu.dot_dimension_numbers<[1], [0], [0], [1], [0, 0, 1, 1], [], []>} : vector<1x256xf32>, vector<256x128xf32>, vector<1x128xf32> -> vector<1x128xf32>
    %87 = arith.negf %86 : vector<1x128xf32>
    %88 = math.exp %87 : vector<1x128xf32>
    %cst_45 = arith.constant 1.000000e+00 : f32
    %89 = vector.broadcast %cst_45 : f32 to vector<1x128xf32>
    %90 = arith.addf %89, %88 : vector<1x128xf32>
    %91 = arith.divf %89, %90 : vector<1x128xf32>
    %92 = arith.mulf %75, %77 : vector<32x128xf32>
    %93 = vector.broadcast %91 : vector<1x128xf32> to vector<32x128xf32>
    %94 = arith.mulf %92, %93 : vector<32x128xf32>
    %95 = arith.mulf %0, %94 : vector<32x128xf32>
    %c0_46 = arith.constant 0 : index
    %c0_47 = arith.constant 0 : index
    %96 = vector.load %arg10[%c0_46, %c0_47] : memref<32x128xf32, #tpu.memory_space<vmem>>, vector<32x128xf32>
    tpu.vector_store %arg10[%c0_46, %c0_47], %95 {strides = array<i32>} : memref<32x128xf32, #tpu.memory_space<vmem>>, vector<32x128xf32>,
    return
  }
}

</mosaic_0001>

<bundles_post_ra>
// kernel: tpu_custom_call.1
= control target key start
LH: loop header
LB: loop body
LE: loop exit
PB: predicated region body
PF: predicated region fallthrough
CT: control target
= control target key end

     0   :  { %15 = vsyncpa [#allocation3], 0  ;;  %s2447_s0 = inlined_call_operand.hbm [shape: f32[32,128], index: 0, kind: input, shape index: {}]   ;;  %s2448_s1 = inlined_call_operand.hbm [shape: f32[32,64], index: 1, kind: input, shape index: {}]   ;;  %s2449_s2 = inlined_call_operand.vmem [shape: f32[128,32], index: 2, kind: input, shape index: {}]   ;;  %s2450_s3 = inlined_call_operand.vmem [shape: f32[256,32], index: 3, kind: input, shape index: {}]   ;;  %s2451_s4 = inlined_call_operand.vmem [shape: f32[7,32,32], index: 4, kind: input, shape index: {}]   ;;  %s2452_s5 = inlined_call_operand.vmem [shape: f32[32,1], index: 5, kind: input, shape index: {}]   ;;  %s2453_s6 = inlined_call_operand.vmem [shape: f32[32,1], index: 6, kind: input, shape index: {}]   ;;  %s2454_s7 = inlined_call_operand.hbm [shape: f32[32,128], index: 7, kind: input, shape index: {}]   ;;  %s2455_s8 = inlined_call_operand.vmem [shape: f32[32,128], index: 8, kind: input, shape index: {}]   ;;  %s2456_s9 = inlined_call_operand.vmem [shape: f32[256,128], index: 9, kind: input, shape index: {}]   ;;  %s2457_s10 = inlined_call_operand.hbm [shape: f32[32,128], index: 10, kind: output, shape index: {}]  }
   0x1   :  { %16 = vsyncpa [#allocation6], 0 }
   0x2   :  { %17 = vsyncpa [#allocation4], 0  ;;  %s1761_s13 = smov [#allocation5]   ;;  %s1762_s15 = smov [#allocation2]  }
   0x3   :  { %s35_s14 = sshll.u32 %s1761_s13, 4  ;;  %s23_s16 = sshll.u32 %s1762_s15, 4  ;;  %s36_s14 = int_to_ptr.vmem [resolvable:$true] %s35_s14  ;;  %s1840_s16 = int_to_ptr.vmem [resolvable:$true] %s23_s16 }
   0x4   :  { %s1667_s19 = scalar_lea.hbm %s2448_s1, 512 }
   0x5   :  { %p1668_p0 = scmp.ne.s32.totalorder %s2448_s1, %s1667_s19  ;;  %p1671_p1 = scmp.lt.u32.totalorder %s1667_s19, %s2448_s1 }
   0x7   :  { %p1673_p2 = pnand %p1671_p1, %p1668_p0 }
   0x9   :  { %1676 = shalt.err (!%p1673_p2)
}
   0xa   :  { %s1677_s24 = scalar_lea.vmem %s36_s14, 512  ;;  %p1682_p4 = scmp.lt.s32.totalorder %s36_s14, %s36_s14 }
   0xb   :  { %p1678_p3 = scmp.ne.s32.totalorder %s36_s14, %s1677_s24  ;;  %p1683_p5 = scmp.lt.s32.totalorder %s1677_s24, %s1677_s24 }
   0xd   :  { %p1684_p6 = por %p1683_p5, %p1682_p4 }
   0xf   :  { %p1685_p7 = pnand %p1684_p6, %p1678_p3 }
  0x11   :  { %1688 = shalt.err (!%p1685_p7)
}
  0x12   :  { %s1763_s25 = smov 128   ;;  %s1764_s26 = smov 8  }
  0x13   :  { %41 = dma.hbm_to_vmem [thread:$0]  %s2448_s1, 512, %s36_s14, [#allocation6], %s1763_s25, %s1763_s25, %s1764_s26  }
  0x14   :  { %s1689_s11 = scalar_lea.hbm %s2447_s0, 512 }
  0x15   :  { %p1690_p8 = scmp.ne.s32.totalorder %s2447_s0, %s1689_s11  ;;  %p1693_p9 = scmp.lt.u32.totalorder %s1689_s11, %s2447_s0 }
  0x17   :  { %p1695_p10 = pnand %p1693_p9, %p1690_p8 }
  0x19   :  { %1698 = shalt.err (!%p1695_p10)
}
  0x1a   :  { %s1699_s18 = scalar_lea.vmem %s1840_s16, 512  ;;  %p1704_p12 = scmp.lt.s32.totalorder %s1840_s16, %s1840_s16 }
  0x1b   :  { %p1700_p11 = scmp.ne.s32.totalorder %s1840_s16, %s1699_s18  ;;  %p1705_p13 = scmp.lt.s32.totalorder %s1699_s18, %s1699_s18 }
  0x1d   :  { %p1706_p0 = por %p1705_p13, %p1704_p12 }
  0x1f   :  { %p1707_p1 = pnand %p1706_p0, %p1700_p11 }
  0x21   :  { %1710 = shalt.err (!%p1707_p1)
}
  0x22   :  { %29 = dma.hbm_to_vmem [thread:$0]  %s2447_s0, 512, %s1840_s16, [#allocation3], %s1763_s25, %s1763_s25, %s1764_s26  }
  0x23   :  { %s1765_s19 = smov [#allocation7]   ;;  %s1711_s23 = scalar_lea.hbm %s2454_s7, 512 }
  0x24   :  { %s57_s20 = sshll.u32 %s1765_s19, 4  ;;  %p1712_p2 = scmp.ne.s32.totalorder %s2454_s7, %s1711_s23  ;;  %s58_s20 = int_to_ptr.vmem [resolvable:$true] %s57_s20 }
  0x25   :  { %p1715_p3 = scmp.lt.u32.totalorder %s1711_s23, %s2454_s7 }
  0x27   :  { %p1717_p4 = pnand %p1715_p3, %p1712_p2 }
  0x29   :  { %1720 = shalt.err (!%p1717_p4)
}
  0x2a   :  { %s1721_s30 = scalar_lea.vmem %s58_s20, 512  ;;  %p1726_p6 = scmp.lt.s32.totalorder %s58_s20, %s58_s20 }
  0x2b   :  { %p1722_p5 = scmp.ne.s32.totalorder %s58_s20, %s1721_s30  ;;  %p1727_p7 = scmp.lt.s32.totalorder %s1721_s30, %s1721_s30 }
  0x2d   :  { %p1728_p8 = por %p1727_p7, %p1726_p6 }
  0x2f   :  { %p1729_p9 = pnand %p1728_p8, %p1722_p5 }
  0x31   :  { %1732 = shalt.err (!%p1729_p9)
}
  0x32   :  { %63 = dma.hbm_to_vmem [thread:$0]  %s2454_s7, 512, %s58_s20, [#allocation6], %s1763_s25, %s1763_s25, %s1764_s26  }
  0x33   :  { %1755 = dma.done.wait [#allocation3], 512  }
  0x34   :  { %1756 = vsyncadd [#allocation3], 4294966784 }
  0x35   :  { %1757 = dma.done.wait [#allocation6], 1024  }
  0x36   :  { %1758 = vsyncadd [#allocation6], 4294966272  ;;  %v1892_v0 = vld [vmem:[#allocation2] sm:$0xff]  ;;  %v1894_v1 = vld [vmem:[#allocation2 + $0x8] sm:$0xff]  ;;  %s1766_s11 = smov 120   ;;  %s1767_s12 = smov 127  }
  0x37   :  { %218 = vrot.lane.b32.xlu0 %v1892_v0, %s1766_s11  ;;  %220 = vrot.lane.b32.xlu1 %v1894_v1, %s1766_s11  ;;  %v1903_v2 = vld [vmem:[#allocation2 + $0x10] sm:$0xff]  ;;  %v1908_v3 = vld [vmem:[#allocation2 + $0x18] sm:$0xff]  ;;  %s1768_s7 = smov 112   ;;  %s1769_s13 = smov 126   ;;  %v81_v14 = vld [vmem:[%s2449_s2] sm:$0xff]  ;;  %vm375_vm0 = vcmask 523264  }
  0x38   :  { %1433 = vmatprep.mubr.f32.mxu0 %v1892_v0  ;;  %v82_v15 = vld [vmem:[%s2449_s2 + $0x8] sm:$0xff]  ;;  %v270_v16 = vld [vmem:[%s2450_s3 + $0x80] sm:$0xff]  ;;  %v83_v24 = vld [vmem:[%s2449_s2 + $0x10] sm:$0xff]  ;;  %s1772_s1 = smov 32   ;;  %s1773_s22 = smov 29   ;;  %vm482_vm1 = vcmask 1047808  }
  0x39   :  { %v1489_v18 = vpack.c.bf16 %v82_v15, %v81_v14  ;;  %v271_v19 = vld [vmem:[%s2450_s3 + $0x88] sm:$0xff]  ;;  %v254_v20 = vld [vmem:[%s2450_s3] sm:$0xff]  ;;  %v84_v25 = vld [vmem:[%s2449_s2 + $0x18] sm:$0xff]  ;;  %s1774_s28 = smov 31   ;;  %s1776_s29 = smov 30   ;;  %vm880_vm2 = vcmask 261120  }
  0x3a   :  { %v255_v21 = vld [vmem:[%s2450_s3 + $0x8] sm:$0xff]  ;;  %v1521_v22 = vpack.c.bf16 %v271_v19, %v270_v16  ;;  %v272_v26 = vld [vmem:[%s2450_s3 + $0x90] sm:$0xff]  ;;  %v1493_v28 = vpack.c.bf16 %v84_v25, %v83_v24  ;;  %v273_v29 = vld [vmem:[%s2450_s3 + $0x98] sm:$0xff]  ;;  %s1778_s30 = smov 2   ;;  %s1779_s14 = smov 3  }
  0x3b   :  { %182 = vrot.lane.b32.xlu0 %v1892_v0, %s1767_s12  ;;  %184 = vrot.lane.b32.xlu1 %v1894_v1, %s1767_s12  ;;  %v1523_v23 = vpack.c.bf16 %v255_v21, %v254_v20  ;;  %v256_v30 = vld [vmem:[%s2450_s3 + $0x10] sm:$0xff]  ;;  %v1525_v33 = vpack.c.bf16 %v273_v29, %v272_v26  ;;  %v257_v34 = vld [vmem:[%s2450_s3 + $0x18] sm:$0xff]  ;;  %s1781_s0 = smov 98   ;;  %s1783_s16 = smov 97  }
  0x3c   :  { %1490 = vmatprep.subr.bf16.mxu0 %v1489_v18  ;;  %1522 = vmatprep.subr.bf16.mxu1 %v1521_v22  ;;  %v85_v35 = vld [vmem:[%s2449_s2 + $0x20] sm:$0xff]  ;;  %v86_v36 = vld [vmem:[%s2449_s2 + $0x28] sm:$0xff]  ;;  %v1527_v38 = vpack.c.bf16 %v257_v34, %v256_v30  ;;  %v87_v45 = vld [vmem:[%s2449_s2 + $0x30] sm:$0xff] }
  0x3d   :  { %1492 = vmatpush3.bf16.msra.mxu0 %v1489_v18  ;;  %1524 = vmatpush3.bf16.msra.mxu1 %v1523_v23  ;;  %v274_v39 = vld [vmem:[%s2450_s3 + $0xa0] sm:$0xff]  ;;  %v275_v40 = vld [vmem:[%s2450_s3 + $0xa8] sm:$0xff]  ;;  %v1497_v42 = vpack.c.bf16 %v86_v36, %v85_v35  ;;  %v88_v46 = vld [vmem:[%s2449_s2 + $0x38] sm:$0xff] }
  0x3e   :  { %v258_v41 = vld [vmem:[%s2450_s3 + $0x20] sm:$0xff]  ;;  %1494 = vmatprep.subr.bf16.mxu0 %v1493_v28  ;;  %1526 = vmatprep.subr.bf16.mxu1 %v1525_v33  ;;  %v1529_v43 = vpack.c.bf16 %v275_v40, %v274_v39  ;;  %v259_v44 = vld [vmem:[%s2450_s3 + $0x28] sm:$0xff]  ;;  %v276_v48 = vld [vmem:[%s2450_s3 + $0xb0] sm:$0xff]  ;;  %v1501_v51 = vpack.c.bf16 %v88_v46, %v87_v45 }
  0x3f   :  { %222 = vrot.lane.b32.xlu0 %v1903_v2, %s1766_s11  ;;  %186 = vrot.lane.b32.xlu1 %v1903_v2, %s1767_s12  ;;  %v277_v49 = vld [vmem:[%s2450_s3 + $0xb8] sm:$0xff]  ;;  %v1531_v50 = vpack.c.bf16 %v259_v44, %v258_v41  ;;  %v260_v53 = vld [vmem:[%s2450_s3 + $0x30] sm:$0xff] }
  0x40   :  { %v1533_v52 = vpack.c.bf16 %v277_v49, %v276_v48  ;;  %v261_v54 = vld [vmem:[%s2450_s3 + $0x38] sm:$0xff]  ;;  %v89_v55 = vld [vmem:[%s2449_s2 + $0x40] sm:$0xff]  ;;  %v90_v56 = vld [vmem:[%s2449_s2 + $0x48] sm:$0xff] }
  0x41   :  { %1496 = vmatpush3.bf16.msra.mxu0 %v1493_v28  ;;  %1528 = vmatpush3.bf16.msra.mxu1 %v1527_v38  ;;  %v278_v57 = vld [vmem:[%s2450_s3 + $0xc0] sm:$0xff]  ;;  %v279_v58 = vld [vmem:[%s2450_s3 + $0xc8] sm:$0xff]  ;;  %v1535_v59 = vpack.c.bf16 %v261_v54, %v260_v53  ;;  %v1505_v60 = vpack.c.bf16 %v90_v56, %v89_v55  ;;  %v264_v15 = vld [vmem:[%s2450_s3 + $0x50] sm:$0xff] }
  0x42   :  { %1498 = vmatprep.subr.bf16.mxu0 %v1497_v42  ;;  %1530 = vmatprep.subr.bf16.mxu1 %v1529_v43  ;;  %v1537_v61 = vpack.c.bf16 %v279_v58, %v278_v57  ;;  %v262_v62 = vld [vmem:[%s2450_s3 + $0x40] sm:$0xff]  ;;  %v263_v63 = vld [vmem:[%s2450_s3 + $0x48] sm:$0xff]  ;;  %v265_v16 = vld [vmem:[%s2450_s3 + $0x58] sm:$0xff] }
  0x43   :  { %224 = vrot.lane.b32.xlu0 %v1908_v3, %s1766_s11  ;;  %188 = vrot.lane.b32.xlu1 %v1908_v3, %s1767_s12  ;;  %v93_v18 = vld [vmem:[%s2449_s2 + $0x60] sm:$0xff]  ;;  %v94_v19 = vld [vmem:[%s2449_s2 + $0x68] sm:$0xff]  ;;  %v1543_v22 = vpack.c.bf16 %v265_v16, %v264_v15 }
  0x44   :  { %v282_v20 = vld [vmem:[%s2450_s3 + $0xe0] sm:$0xff]  ;;  %v283_v21 = vld [vmem:[%s2450_s3 + $0xe8] sm:$0xff]  ;;  %v1513_v23 = vpack.c.bf16 %v94_v19, %v93_v18  ;;  %v95_v29 = vld [vmem:[%s2449_s2 + $0x70] sm:$0xff] }
  0x45   :  { %1500 = vmatpush3.bf16.msra.mxu0 %v1497_v42  ;;  %1532 = vmatpush3.bf16.msra.mxu1 %v1531_v50  ;;  %v1545_v24 = vpack.c.bf16 %v283_v21, %v282_v20  ;;  %v266_v25 = vld [vmem:[%s2450_s3 + $0x60] sm:$0xff]  ;;  %v267_v26 = vld [vmem:[%s2450_s3 + $0x68] sm:$0xff]  ;;  %v96_v30 = vld [vmem:[%s2449_s2 + $0x78] sm:$0xff] }
  0x46   :  { %1502 = vmatprep.subr.bf16.mxu0 %v1501_v51  ;;  %1534 = vmatprep.subr.bf16.mxu1 %v1533_v52  ;;  %v1547_v28 = vpack.c.bf16 %v267_v26, %v266_v25  ;;  %v285_v33 = vld [vmem:[%s2450_s3 + $0xf8] sm:$0xff]  ;;  %v268_v35 = vld [vmem:[%s2450_s3 + $0x70] sm:$0xff] }
  0x47   :  { %v269_v36 = vld [vmem:[%s2450_s3 + $0x78] sm:$0xff] }
  0x48   :  { %v1551_v38 = vpack.c.bf16 %v269_v36, %v268_v35 }
  0x49   :  { %1504 = vmatpush3.bf16.msra.mxu0 %v1501_v51  ;;  %1536 = vmatpush3.bf16.msra.mxu1 %v1535_v59 }
  0x4a   :  { %1506 = vmatprep.subr.bf16.mxu0 %v1505_v60  ;;  %1538 = vmatprep.subr.bf16.mxu1 %v1537_v61 }
  0x4d   :  { %1508 = vmatpush3.bf16.msra.mxu0 %v1505_v60 }
  0xa9   :  { %v219_v4 = vpop.permute.xlu0 %218  ;;  %v221_v5 = vpop.permute.xlu1 %220 }
  0xaa   :  { %v1914_v6 = vmax.f32 %v1892_v0, %v219_v4  ;;  %v1919_v7 = vmax.f32 %v1894_v1, %v221_v5  ;;  %v91_v4 = vld [vmem:[%s2449_s2 + $0x50] sm:$0xff]  ;;  %v92_v5 = vld [vmem:[%s2449_s2 + $0x58] sm:$0xff]  ;;  %s1770_s2 = smov 96  }
  0xac   :  { %230 = vrot.lane.b32.xlu0 %v1914_v6, %s1768_s7 }
  0xad   :  { %v183_v8 = vpop.permute.xlu0 %182  ;;  %v185_v9 = vpop.permute.xlu1 %184 }
  0xae   :  { %v1922_v10 = vmax.f32 %v1892_v0, %v183_v8  ;;  %v1929_v11 = vmax.f32 %v1894_v1, %v185_v9  ;;  %v280_v8 = vld [vmem:[%s2450_s3 + $0xd0] sm:$0xff]  ;;  %v281_v9 = vld [vmem:[%s2450_s3 + $0xd8] sm:$0xff] }
  0xaf   :  { %v1541_v14 = vpack.c.bf16 %v281_v9, %v280_v8 }
  0xb0   :  { %232 = vrot.lane.b32.xlu0 %v1919_v7, %s1768_s7  ;;  %194 = vrot.lane.b32.xlu1 %v1922_v10, %s1769_s13 }
  0xb1   :  { %v223_v12 = vpop.permute.xlu0 %222  ;;  %v187_v13 = vpop.permute.xlu1 %186 }
  0xb2   :  { %v1941_v17 = vmax.f32 %v1903_v2, %v223_v12  ;;  %v1966_v27 = vmax.f32 %v1903_v2, %v187_v13  ;;  %v1539_v12 = vpack.c.bf16 %v263_v63, %v262_v62  ;;  %v1509_v13 = vpack.c.bf16 %v92_v5, %v91_v4 }
  0xb4   :  { %196 = vrot.lane.b32.xlu1 %v1929_v11, %s1769_s13  ;;  %234 = vrot.lane.b32.xlu0 %v1941_v17, %s1768_s7 }
  0xb5   :  { %v225_v31 = vpop.permute.xlu0 %224  ;;  %v189_v32 = vpop.permute.xlu1 %188  ;;  %1540 = vmatpush3.bf16.msra.mxu1 %v1539_v12  ;;  %1510 = vmatprep.subr.bf16.mxu0 %v1509_v13 }
  0xb6   :  { %v1984_v37 = vmax.f32 %v1908_v3, %v225_v31  ;;  %v2009_v47 = vmax.f32 %v1908_v3, %v189_v32  ;;  %1542 = vmatprep.subr.bf16.mxu1 %v1541_v14  ;;  %1512 = vmatpush3.bf16.msra.mxu0 %v1509_v13  ;;  %v1517_v31 = vpack.c.bf16 %v96_v30, %v95_v29  ;;  %v284_v32 = vld [vmem:[%s2450_s3 + $0xf0] sm:$0xff]  ;;  %s1771_s3 = smov 124   ;;  %v371_v14 = vld [vmem:[#allocation5] sm:$0xff] }
  0xb7   :  { %1514 = vmatprep.subr.bf16.mxu0 %v1513_v23  ;;  %v1549_v34 = vpack.c.bf16 %v285_v33, %v284_v32  ;;  %v373_v32 = vld [vmem:[#allocation5 + $0x10] sm:$0xff]  ;;  %v374_v33 = vld [vmem:[#allocation5 + $0x18] sm:$0xff] }
  0xb8   :  { %198 = vrot.lane.b32.xlu1 %v1966_v27, %s1769_s13  ;;  %236 = vrot.lane.b32.xlu0 %v1984_v37, %s1768_s7 }
  0xb9   :  { %1544 = vmatpush3.bf16.msra.mxu1 %v1543_v22 }
  0xba   :  { %1546 = vmatprep.subr.bf16.mxu1 %v1545_v24  ;;  %1516 = vmatpush3.bf16.msra.mxu0 %v1513_v23 }
  0xbb   :  { %1518 = vmatprep.subr.bf16.mxu0 %v1517_v31 }
  0xbc   :  { %200 = vrot.lane.b32.xlu1 %v2009_v47, %s1769_s13 }
  0xbd   :  { %1548 = vmatpush3.bf16.msra.mxu1 %v1547_v28 }
  0xbe   :  { %1520 = vmatpush3.bf16.msra.mxu0 %v1517_v31  ;;  %1550 = vmatprep.subr.bf16.mxu1 %v1549_v34  ;;  %v372_v31 = vld [vmem:[#allocation5 + $0x8] sm:$0xff] }
  0xc1   :  { %1552 = vmatpush3.bf16.msra.mxu1 %v1551_v38  ;;  %1434 = vmatmul.mubr.f32.vlgmr.msra.gmra.mrb[0].mxu0 %v1894_v1 }
  0xc2   :  { %1436 = vmatprep.mubr.f32.mxu0 %v1903_v2 }
  0xc5   :  { %1437 = vmatmul.mubr.f32.gmra.mrb[2].mxu0 %v1908_v3 }
  0xc6   :  { %1455 = vmatprep.mubr.msk.f32.mxu0 %vm375_vm0, %v371_v14  ;;  %v779_v14 = vld [vmem:[%s2452_s5 + $0x18] sm:$0xff] }
 0x11e   :  { %v231_v39 = vpop.permute.xlu0 %230 }
 0x11f   :  { %v238_v40 = vmax.f32 %v1914_v6, %v231_v39  ;;  %v508_v39 = vld [vmem:[%s2451_s4 + $0x8] sm:$0xff] }
 0x121   :  { %242 = vrot.lane.b32.xlu0 %v238_v40, %s1770_s2 }
 0x122   :  { %v195_v41 = vpop.permute.xlu1 %194  ;;  %v233_v42 = vpop.permute.xlu0 %232 }
 0x123   :  { %v202_v43 = vmax.f32 %v1922_v10, %v195_v41  ;;  %v239_v44 = vmax.f32 %v1919_v7, %v233_v42  ;;  %v1245_v41 = vld [vmem:[%s2451_s4 + $0x40] sm:$0xff] }
 0x124   :  { %v1241_v42 = vld [vmem:[%s2451_s4 + $0x20] sm:$0xff] }
 0x125   :  { %206 = vrot.lane.b32.xlu1 %v202_v43, %s1771_s3  ;;  %244 = vrot.lane.b32.xlu0 %v239_v44, %s1770_s2 }
 0x126   :  { %v197_v45 = vpop.permute.xlu1 %196  ;;  %v235_v46 = vpop.permute.xlu0 %234 }
 0x127   :  { %v203_v48 = vmax.f32 %v1929_v11, %v197_v45  ;;  %v240_v49 = vmax.f32 %v1941_v17, %v235_v46  ;;  %v1242_v45 = vld [vmem:[%s2451_s4 + $0x28] sm:$0xff]  ;;  %v1249_v46 = vld [vmem:[%s2451_s4 + $0x80] sm:$0xff] }
 0x129   :  { %208 = vrot.lane.b32.xlu1 %v203_v48, %s1771_s3  ;;  %246 = vrot.lane.b32.xlu0 %v240_v49, %s1770_s2 }
 0x12a   :  { %v199_v6 = vpop.permute.xlu1 %198  ;;  %v237_v50 = vpop.permute.xlu0 %236 }
 0x12b   :  { %v204_v51 = vmax.f32 %v1966_v27, %v199_v6  ;;  %v241_v52 = vmax.f32 %v1984_v37, %v237_v50  ;;  %v510_v6 = vld [vmem:[%s2451_s4 + $0x18] sm:$0xff]  ;;  %v1253_v50 = vld [vmem:[%s2451_s4 + $0xa0] sm:$0xff] }
 0x12d   :  { %210 = vrot.lane.b32.xlu1 %v204_v51, %s1771_s3  ;;  %248 = vrot.lane.b32.xlu0 %v241_v52, %s1770_s2 }
 0x12e   :  { %v201_v7 = vpop.permute.xlu1 %200 }
 0x12f   :  { %v205_v10 = vmax.f32 %v2009_v47, %v201_v7  ;;  %v1244_v7 = vld [vmem:[%s2451_s4 + $0x38] sm:$0xff] }
 0x131   :  { %212 = vrot.lane.b32.xlu1 %v205_v10, %s1771_s3  ;;  %s1777_s3 = smov 1  }
 0x193   :  { %v243_v53 = vpop.permute.xlu0 %242 }
 0x194   :  { %v250_v54 = vmax.f32 %v238_v40, %v243_v53  ;;  %v1435_v4 = vpop.f32.mrb[0].mxu0  ;;  %v507_v40 = vld [vmem:[%s2451_s4] sm:$0xff]  ;;  %v1247_v53 = vld [vmem:[%s2451_s4 + $0x50] sm:$0xff] }
 0x195   :  { %v163_v5 = vpop.f32.mrb[1].mxu0 }
 0x196   :  { %350 = vmatprep.mubr.f32.mxu1 %v250_v54  ;;  %v1553_v8 = vpack.c.bf16 %v1435_v4, %v163_v5  ;;  %v1258_v54 = vld [vmem:[%s2451_s4 + $0xc8] sm:$0xff]  ;;  %v776_v4 = vld [vmem:[%s2452_s5] sm:$0xff]  ;;  %v1260_v5 = vld [vmem:[%s2451_s4 + $0xd8] sm:$0xff] }
 0x197   :  { %v207_v11 = vpop.permute.xlu1 %206  ;;  %v245_v55 = vpop.permute.xlu0 %244 }
 0x198   :  { %v214_v17 = vmax.f32 %v202_v43, %v207_v11  ;;  %v251_v56 = vmax.f32 %v239_v44, %v245_v55  ;;  %v1438_v9 = vpop.f32.mrb[2].mxu0  ;;  %1554 = vmatprep.subr.bf16.mxu0 %v1553_v8  ;;  %v1775_v43 = vmov 0   ;;  %v1246_v44 = vld [vmem:[%s2451_s4 + $0x48] sm:$0xff]  ;;  %v1248_v11 = vld [vmem:[%s2451_s4 + $0x58] sm:$0xff]  ;;  %v1251_v55 = vld [vmem:[%s2451_s4 + $0x90] sm:$0xff] }
 0x199   :  { %v173_v12 = vpop.f32.mrb[3].mxu0  ;;  %1556 = vmatpush3.bf16.msra.mxu0 %v1553_v8  ;;  %1641 = vset.pattern.permute.xlu0 %v1775_v43  ;;  %v777_v8 = vld [vmem:[%s2452_s5 + $0x8] sm:$0xff] }
 0x19a   :  { %351 = vmatmul.mubr.f32.vlgmr.msra.gmra.mrb[0].mxu1 %v214_v17  ;;  %v1557_v13 = vpack.c.bf16 %v1438_v9, %v173_v12  ;;  %1642 = vset.pattern.permute.xlu1 %v1775_v43  ;;  %v1252_v17 = vld [vmem:[%s2451_s4 + $0x98] sm:$0xff]  ;;  %v804_v9 = vld [vmem:[%s2453_s6] sm:$0xff]  ;;  %v805_v12 = vld [vmem:[%s2453_s6 + $0x8] sm:$0xff] }
 0x19b   :  { %v209_v57 = vpop.permute.xlu1 %208  ;;  %355 = vmatprep.mubr.f32.mxu1 %v251_v56  ;;  %v247_v58 = vpop.permute.xlu0 %246 }
 0x19c   :  { %v215_v27 = vmax.f32 %v203_v48, %v209_v57  ;;  %v252_v59 = vmax.f32 %v240_v49, %v247_v58  ;;  %1558 = vmatprep.subr.bf16.mxu0 %v1557_v13  ;;  %v509_v48 = vld [vmem:[%s2451_s4 + $0x10] sm:$0xff]  ;;  %v1250_v49 = vld [vmem:[%s2451_s4 + $0x88] sm:$0xff] }
 0x19d   :  { %1560 = vmatpush3.bf16.msra.mxu0 %v1557_v13  ;;  %v778_v13 = vld [vmem:[%s2452_s5 + $0x10] sm:$0xff]  ;;  %s1780_s5 = smov 99  }
 0x19e   :  { %356 = vmatmul.mubr.f32.gmra.mrb[2].mxu1 %v215_v27 }
 0x19f   :  { %v211_v37 = vpop.permute.xlu1 %210  ;;  %360 = vmatprep.mubr.f32.mxu1 %v252_v59  ;;  %v249_v60 = vpop.permute.xlu0 %248 }
 0x1a0   :  { %v216_v61 = vmax.f32 %v204_v51, %v211_v37  ;;  %v253_v47 = vmax.f32 %v241_v52, %v249_v60  ;;  %v1243_v51 = vld [vmem:[%s2451_s4 + $0x30] sm:$0xff]  ;;  %v1254_v52 = vld [vmem:[%s2451_s4 + $0xa8] sm:$0xff] }
 0x1a1   :  { %v1255_v37 = vld [vmem:[%s2451_s4 + $0xb0] sm:$0xff] }
 0x1a2   :  { %361 = vmatmul.mubr.f32.gmra.mrb[4].mxu1 %v216_v61 }
 0x1a3   :  { %v213_v62 = vpop.permute.xlu1 %212  ;;  %365 = vmatprep.mubr.f32.mxu1 %v253_v47  ;;  %v1259_v47 = vld [vmem:[%s2451_s4 + $0xd0] sm:$0xff] }
 0x1a4   :  { %v217_v63 = vmax.f32 %v205_v10, %v213_v62  ;;  %v1257_v10 = vld [vmem:[%s2451_s4 + $0xc0] sm:$0xff] }
 0x1a6   :  { %366 = vmatmul.mubr.f32.gmra.mrb[6].mxu1 %v217_v63  ;;  %v1256_v63 = vld [vmem:[%s2451_s4 + $0xb8] sm:$0xff] }
 0x26d   :  { %v1326_v15 = vpop.f32.mrb[0].mxu1 }
 0x26e   :  { %v1327_v16 = vpop.f32.mrb[1].mxu1 }
 0x26f   :  { %v1328_v18 = vadd.f32 %v1327_v16, %v1326_v15  ;;  %v806_v15 = vld [vmem:[%s2453_s6 + $0x10] sm:$0xff] }
 0x271   :  { %v1329_v19 = vpop.f32.mrb[2].mxu1 }
 0x272   :  { %v1330_v20 = vpop.f32.mrb[3].mxu1 }
 0x273   :  { %v1331_v21 = vadd.f32 %v1330_v20, %v1329_v19 }
 0x275   :  { %v1561_v22 = vpack.c.bf16 %v1331_v21, %v1328_v18  ;;  %v1332_v23 = vpop.f32.mrb[4].mxu1 }
 0x276   :  { %v1333_v24 = vpop.f32.mrb[5].mxu1 }
 0x277   :  { %v1334_v25 = vadd.f32 %v1333_v24, %v1332_v23  ;;  %1562 = vmatprep.subr.bf16.mxu0 %v1561_v22 }
 0x278   :  { %1564 = vmatpush3.bf16.msra.mxu0 %v1561_v22 }
 0x279   :  { %v1335_v26 = vpop.f32.mrb[6].mxu1 }
 0x27a   :  { %v1336_v28 = vpop.f32.mrb[7].mxu1 }
 0x27b   :  { %v1337_v29 = vadd.f32 %v1336_v28, %v1335_v26 }
 0x27d   :  { %v1565_v30 = vpack.c.bf16 %v1337_v29, %v1334_v25 }
 0x27f   :  { %1566 = vmatprep.subr.bf16.mxu0 %v1565_v30 }
 0x280   :  { %1568 = vmatpush3.bf16.msra.mxu0 %v1565_v30 }
 0x283   :  { %1456 = vmatmul.mubr.msk.f32.vlgmr.msra.gmra.mrb[4].mxu0 %vm375_vm0, %v372_v31 }
 0x284   :  { %1458 = vmatprep.mubr.msk.f32.mxu0 %vm375_vm0, %v373_v32 }
 0x287   :  { %1459 = vmatmul.mubr.msk.f32.gmra.mrb[6].mxu0 %vm375_vm0, %v374_v33 }
 0x356   :  { %v2112_v34 = vpop.f32.mrb[4].mxu0 }
 0x357   :  { %486 = vrot.lane.b32.xlu1 %v2112_v34, %s1772_s1  ;;  %v2116_v35 = vpop.f32.mrb[5].mxu0 }
 0x358   :  { %483 = vrot.lane.b32.xlu0 %v2116_v35, %s1772_s1 }
 0x35a   :  { %v2120_v36 = vpop.f32.mrb[6].mxu0 }
 0x35b   :  { %492 = vrot.lane.b32.xlu1 %v2120_v36, %s1772_s1  ;;  %v2124_v38 = vpop.f32.mrb[7].mxu0 }
 0x35c   :  { %489 = vrot.lane.b32.xlu0 %v2124_v38, %s1772_s1 }
 0x35f   :  { %517 = vrot.lane.b32.xlu1 %v508_v39, %s1773_s22 }
 0x360   :  { %515 = vrot.lane.b32.xlu0 %v507_v40, %s1773_s22 }
 0x363   :  { %605 = vrot.lane.b32.xlu1 %v1245_v41, %s1774_s28 }
 0x364   :  { %560 = vrot.lane.b32.xlu0 %v1241_v42, %s1776_s29 }
 0x367   :  { %607 = vrot.lane.b32.xlu1 %v1246_v44, %s1774_s28 }
 0x368   :  { %562 = vrot.lane.b32.xlu0 %v1242_v45, %s1776_s29 }
 0x36b   :  { %650 = vrot.lane.b32.xlu1 %v1249_v46, %s1777_s3 }
 0x36c   :  { %519 = vrot.lane.b32.xlu0 %v509_v48, %s1773_s22 }
 0x36f   :  { %652 = vrot.lane.b32.xlu1 %v1250_v49, %s1777_s3 }
 0x370   :  { %521 = vrot.lane.b32.xlu0 %v510_v6, %s1773_s22 }
 0x373   :  { %695 = vrot.lane.b32.xlu1 %v1253_v50, %s1778_s30 }
 0x374   :  { %564 = vrot.lane.b32.xlu0 %v1243_v51, %s1776_s29 }
 0x377   :  { %697 = vrot.lane.b32.xlu1 %v1254_v52, %s1778_s30 }
 0x378   :  { %566 = vrot.lane.b32.xlu0 %v1244_v7, %s1776_s29 }
 0x37b   :  { %740 = vrot.lane.b32.xlu1 %v1257_v10, %s1779_s14 }
 0x37c   :  { %609 = vrot.lane.b32.xlu0 %v1247_v53, %s1774_s28 }
 0x37f   :  { %742 = vrot.lane.b32.xlu1 %v1258_v54, %s1779_s14 }
 0x380   :  { %611 = vrot.lane.b32.xlu0 %v1248_v11, %s1774_s28 }
 0x384   :  { %654 = vrot.lane.b32.xlu0 %v1251_v55, %s1777_s3 }
 0x388   :  { %656 = vrot.lane.b32.xlu0 %v1252_v17, %s1777_s3  ;;  %s1782_s3 = smov 125  }
 0x3c9   :  { %v487_v56 = vpop.permute.xlu1 %486 }
 0x3ca   :  { %v484_v57 = vpop.permute.xlu0 %483  ;;  %v488_v58 = vsel %vm482_vm1, %v487_v56, %v2112_v34 }
 0x3cb   :  { %497 = vrot.lane.b32.xlu1 %v488_v58, %s1772_s1  ;;  %v485_v27 = vsel %vm482_vm1, %v484_v57, %v2116_v35 }
 0x3cc   :  { %495 = vrot.lane.b32.xlu0 %v485_v27, %s1772_s1 }
 0x3cd   :  { %v493_v59 = vpop.permute.xlu1 %492 }
 0x3ce   :  { %v494_v60 = vsel %vm482_vm1, %v493_v59, %v2120_v36  ;;  %v490_v61 = vpop.permute.xlu0 %489 }
 0x3cf   :  { %501 = vrot.lane.b32.xlu1 %v494_v60, %s1772_s1  ;;  %v491_v62 = vsel %vm482_vm1, %v490_v61, %v2124_v38 }
 0x3d0   :  { %699 = vrot.lane.b32.xlu0 %v1255_v37, %s1778_s30 }
 0x3d1   :  { %v518_v18 = vpop.permute.xlu1 %517 }
 0x3d2   :  { %v516_v16 = vpop.permute.xlu0 %515 }
 0x3d3   :  { %499 = vrot.lane.b32.xlu1 %v491_v62, %s1772_s1 }
 0x3d4   :  { %744 = vrot.lane.b32.xlu0 %v1259_v47, %s1779_s14 }
 0x3d5   :  { %v606_v20 = vpop.permute.xlu1 %605 }
 0x3d6   :  { %v561_v19 = vpop.permute.xlu0 %560 }
 0x3d7   :  { %701 = vrot.lane.b32.xlu1 %v1256_v63, %s1778_s30  ;;  %v1103_v63 = vld [vmem:[%s2456_s9 + $0x80] sm:$0xff] }
 0x3d8   :  { %782 = vperm.xlu0 %1641, %v776_v4   ;;  %v1104_v4 = vld [vmem:[%s2456_s9 + $0x88] sm:$0xff] }
 0x3d9   :  { %v608_v22 = vpop.permute.xlu1 %607 }
 0x3da   :  { %v563_v21 = vpop.permute.xlu0 %562 }
 0x3db   :  { %746 = vrot.lane.b32.xlu1 %v1260_v5, %s1779_s14 }
 0x3dc   :  { %787 = vperm.xlu0 %1641, %v777_v8  }
 0x3dd   :  { %v651_v24 = vpop.permute.xlu1 %650 }
 0x3de   :  { %v520_v23 = vpop.permute.xlu0 %519 }
 0x3df   :  { %810 = vperm.xlu1 %1642, %v804_v9   ;;  %v1585_v9 = vpack.c.bf16 %v1104_v4, %v1103_v63  ;;  %v1115_v4 = vld [vmem:[%s2456_s9 + $0xe0] sm:$0xff] }
 0x3e0   :  { %815 = vperm.xlu0 %1641, %v805_v12   ;;  %v1087_v12 = vld [vmem:[%s2456_s9] sm:$0xff] }
 0x3e1   :  { %v653_v26 = vpop.permute.xlu1 %652  ;;  %1586 = vmatprep.subr.bf16.mxu1 %v1585_v9 }
 0x3e2   :  { %v522_v25 = vpop.permute.xlu0 %521 }
 0x3e3   :  { %792 = vperm.xlu1 %1642, %v778_v13   ;;  %v1088_v13 = vld [vmem:[%s2456_s9 + $0x8] sm:$0xff] }
 0x3e4   :  { %797 = vperm.xlu0 %1641, %v779_v14   ;;  %v1587_v14 = vpack.c.bf16 %v1088_v13, %v1087_v12  ;;  %v1099_v12 = vld [vmem:[%s2456_s9 + $0x60] sm:$0xff]  ;;  %v1100_v13 = vld [vmem:[%s2456_s9 + $0x68] sm:$0xff] }
 0x3e5   :  { %v696_v29 = vpop.permute.xlu1 %695 }
 0x3e6   :  { %v2245_v28 = vpop.permute.xlu0 %564  ;;  %1588 = vmatpush3.bf16.msra.mxu1 %v1587_v14 }
 0x3e7   :  { %820 = vperm.xlu1 %1642, %v806_v15  }
 0x3e9   :  { %v698_v31 = vpop.permute.xlu1 %697 }
 0x3ea   :  { %v567_v30 = vpop.permute.xlu0 %566 }
 0x3ed   :  { %v741_v33 = vpop.permute.xlu1 %740 }
 0x3ee   :  { %v610_v32 = vpop.permute.xlu0 %609 }
 0x3f1   :  { %v743_v40 = vpop.permute.xlu1 %742 }
 0x3f2   :  { %v612_v39 = vpop.permute.xlu0 %611 }
 0x3f6   :  { %v655_v41 = vpop.permute.xlu0 %654 }
 0x3fa   :  { %v657_v44 = vpop.permute.xlu0 %656 }
 0x43d   :  { %v498_v42 = vpop.permute.xlu1 %497 }
 0x43e   :  { %v504_v43 = vsel %vm482_vm1, %v498_v42, %v2112_v34  ;;  %v496_v6 = vpop.permute.xlu0 %495  ;;  %v877_v42 = vld [vmem:[#allocation7 + $0x8] sm:$0xff] }
 0x43f   :  { %v663_v45 = vmul.f32 %v653_v26, %v504_v43  ;;  %v528_v46 = vmul.f32 %v518_v18, %v504_v43  ;;  %v708_v48 = vmul.f32 %v698_v31, %v504_v43  ;;  %v573_v49 = vmul.f32 %v563_v21, %v504_v43  ;;  %v1106_v18 = vld [vmem:[%s2456_s9 + $0x98] sm:$0xff] }
 0x440   :  { %v753_v50 = vmul.f32 %v743_v40, %v504_v43  ;;  %v618_v51 = vmul.f32 %v608_v22, %v504_v43  ;;  %v503_v52 = vsel %vm482_vm1, %v496_v6, %v2116_v35  ;;  %v1089_v22 = vld [vmem:[%s2456_s9 + $0x10] sm:$0xff]  ;;  %v807_v26 = vld [vmem:[%s2453_s6 + $0x18] sm:$0xff] }
 0x441   :  { %672 = vrot.lane.b32.xlu0 %v663_v45, %s1767_s12  ;;  %537 = vrot.lane.b32.xlu1 %v528_v46, %s1780_s5  ;;  %v502_v7 = vpop.permute.xlu1 %501  ;;  %v617_v10 = vmul.f32 %v606_v20, %v503_v52  ;;  %v527_v53 = vmul.f32 %v516_v16, %v503_v52  ;;  %v662_v54 = vmul.f32 %v651_v24, %v503_v52  ;;  %v1105_v16 = vld [vmem:[%s2456_s9 + $0x90] sm:$0xff]  ;;  %v1110_v46 = vld [vmem:[%s2456_s9 + $0xb8] sm:$0xff] }
 0x442   :  { %v572_v11 = vmul.f32 %v561_v19, %v503_v52  ;;  %v506_v55 = vsel %vm482_vm1, %v502_v7, %v2120_v36  ;;  %v707_v56 = vmul.f32 %v696_v29, %v503_v52  ;;  %v752_v27 = vmul.f32 %v741_v33, %v503_v52  ;;  %v700_v15 = vpop.permute.xlu0 %699  ;;  %v1108_v29 = vld [vmem:[%s2456_s9 + $0xa8] sm:$0xff]  ;;  %v1109_v43 = vld [vmem:[%s2456_s9 + $0xb0] sm:$0xff]  ;;  %v879_v7 = vld [vmem:[#allocation7 + $0x18] sm:$0xff] }
 0x443   :  { %v530_v57 = vmul.f32 %v522_v25, %v506_v55  ;;  %v575_v61 = vmul.f32 %v567_v30, %v506_v55  ;;  %v620_v47 = vmul.f32 %v612_v39, %v506_v55  ;;  %v665_v5 = vmul.f32 %v657_v44, %v506_v55  ;;  %v1092_v33 = vld [vmem:[%s2456_s9 + $0x28] sm:$0xff]  ;;  %v878_v52 = vld [vmem:[#allocation7 + $0x10] sm:$0xff] }
 0x444   :  { %v1589_v21 = vpack.c.bf16 %v1106_v18, %v1105_v16  ;;  %v1597_v6 = vpack.c.bf16 %v1110_v46, %v1109_v43 }
 0x445   :  { %717 = vrot.lane.b32.xlu0 %v708_v48, %s1769_s13  ;;  %582 = vrot.lane.b32.xlu1 %v573_v49, %s1781_s0  ;;  %v500_v17 = vpop.permute.xlu1 %499  ;;  %v1093_v48 = vld [vmem:[%s2456_s9 + $0x30] sm:$0xff]  ;;  %v1094_v49 = vld [vmem:[%s2456_s9 + $0x38] sm:$0xff] }
 0x446   :  { %v505_v58 = vsel %vm482_vm1, %v500_v17, %v2124_v38  ;;  %1590 = vmatprep.subr.bf16.mxu1 %v1589_v21  ;;  %v745_v39 = vpop.permute.xlu0 %744  ;;  %v1096_v17 = vld [vmem:[%s2456_s9 + $0x48] sm:$0xff] }
 0x447   :  { %v529_v59 = vmul.f32 %v520_v23, %v505_v58  ;;  %v619_v62 = vmul.f32 %v610_v32, %v505_v58  ;;  %v664_v8 = vmul.f32 %v655_v41, %v505_v58  ;;  %v574_v19 = vmul.f32 %v2245_v28, %v505_v58  ;;  %v1090_v23 = vld [vmem:[%s2456_s9 + $0x18] sm:$0xff]  ;;  %v1107_v28 = vld [vmem:[%s2456_s9 + $0xa0] sm:$0xff] }
 0x448   :  { %v709_v20 = vmul.f32 %v700_v15, %v505_v58  ;;  %v1591_v25 = vpack.c.bf16 %v1090_v23, %v1089_v22  ;;  %v1593_v31 = vpack.c.bf16 %v1108_v29, %v1107_v28  ;;  %v1091_v32 = vld [vmem:[%s2456_s9 + $0x20] sm:$0xff]  ;;  %v754_v44 = vmul.f32 %v745_v39, %v505_v58  ;;  %v1101_v23 = vld [vmem:[%s2456_s9 + $0x70] sm:$0xff] }
 0x449   :  { %762 = vrot.lane.b32.xlu0 %v753_v50, %s1782_s3  ;;  %627 = vrot.lane.b32.xlu1 %v618_v51, %s1783_s16  ;;  %v702_v37 = vpop.permute.xlu1 %701  ;;  %v1595_v40 = vpack.c.bf16 %v1092_v33, %v1091_v32  ;;  %v876_v41 = vld [vmem:[#allocation7] sm:$0xff]  ;;  %v1599_v50 = vpack.c.bf16 %v1094_v49, %v1093_v48  ;;  %v1076_v51 = vadd.f32 %v1894_v1, %v1892_v0  ;;  %v979_v33 = vld [vmem:[%s2455_s8 + $0x8] sm:$0xff] }
 0x44a   :  { %v710_v60 = vmul.f32 %v702_v37, %v506_v55  ;;  %1592 = vmatpush3.bf16.msra.mxu1 %v1591_v25  ;;  %v1569_v45 = vpack.c.bf16 %v877_v42, %v876_v41  ;;  %v1113_v37 = vld [vmem:[%s2456_s9 + $0xd0] sm:$0xff]  ;;  %v1611_v15 = vpack.c.bf16 %v1100_v13, %v1099_v12  ;;  %v978_v32 = vld [vmem:[%s2455_s8] sm:$0xff]  ;;  %v1238_v48 = vld [vmem:[%s2451_s4 + $0x68] sm:$0xff] }
 0x44b   :  { %1594 = vmatprep.subr.bf16.mxu1 %v1593_v31  ;;  %v2389_v39 = vpack.c.bf16 %v979_v33, %v978_v32 }
 0x44c   :  { %1570 = vmatprep.subr.bf16.mxu0 %v1569_v45 }
 0x44d   :  { %625 = vrot.lane.b32.xlu1 %v617_v10, %s1783_s16  ;;  %535 = vrot.lane.b32.xlu0 %v527_v53, %s1780_s5  ;;  %v747_v24 = vpop.permute.xlu1 %746  ;;  %v1111_v10 = vld [vmem:[%s2456_s9 + $0xc0] sm:$0xff]  ;;  %v1077_v53 = vadd.f32 %v1076_v51, %v1903_v2 }
 0x44e   :  { %v755_v30 = vmul.f32 %v747_v24, %v506_v55  ;;  %1596 = vmatpush3.bf16.msra.mxu1 %v1595_v40  ;;  %1572 = vmatpush3.bf16.msra.mxu0 %v1569_v45  ;;  %v1095_v55 = vld [vmem:[%s2456_s9 + $0x40] sm:$0xff]  ;;  %v1102_v24 = vld [vmem:[%s2456_s9 + $0x78] sm:$0xff] }
 0x44f   :  { %1598 = vmatprep.subr.bf16.mxu1 %v1597_v6  ;;  %v1078_v58 = vadd.f32 %v1077_v53, %v1908_v3 }
 0x451   :  { %670 = vrot.lane.b32.xlu1 %v662_v54, %s1767_s12  ;;  %580 = vrot.lane.b32.xlu0 %v572_v11, %s1781_s0  ;;  %v1573_v54 = vpack.c.bf16 %v879_v7, %v878_v52  ;;  %v1112_v11 = vld [vmem:[%s2456_s9 + $0xc8] sm:$0xff] }
 0x452   :  { %1600 = vmatpush3.bf16.msra.mxu1 %v1599_v50  ;;  %v479_v50 = vmul.f32 %v2112_v34, %v1238_v48 }
 0x453   :  { %1574 = vmatprep.subr.bf16.mxu0 %v1573_v54 }
 0x454   :  { %1576 = vmatpush3.bf16.msra.mxu0 %v1573_v54 }
 0x455   :  { %715 = vrot.lane.b32.xlu1 %v707_v56, %s1769_s13  ;;  %541 = vrot.lane.b32.xlu0 %v530_v57, %s1780_s5  ;;  %v1601_v56 = vpack.c.bf16 %v1112_v11, %v1111_v10  ;;  %v1603_v57 = vpack.c.bf16 %v1096_v17, %v1095_v55  ;;  %v1237_v55 = vld [vmem:[%s2451_s4 + $0x60] sm:$0xff] }
 0x456   :  { %1578 = vmatprep.subr.bf16.mxu0 %v2389_v39 }
 0x457   :  { %1602 = vmatprep.subr.bf16.mxu1 %v1601_v56  ;;  %v783_v40 = vpop.permute.xlu0 %782 }
 0x458   :  { %1604 = vmatpush3.bf16.msra.mxu1 %v1603_v57 }
 0x459   :  { %760 = vrot.lane.b32.xlu1 %v752_v27, %s1782_s3  ;;  %539 = vrot.lane.b32.xlu0 %v529_v59, %s1780_s5  ;;  %v1067_v27 = vmax.f32 %v1892_v0, %v1894_v1  ;;  %v1068_v59 = vmax.f32 %v1903_v2, %v1908_v3  ;;  %v1097_v0 = vld [vmem:[%s2456_s9 + $0x50] sm:$0xff]  ;;  %v1098_v1 = vld [vmem:[%s2456_s9 + $0x58] sm:$0xff] }
 0x45a   :  { %v1607_v3 = vpack.c.bf16 %v1098_v1, %v1097_v0 }
 0x45b   :  { %v1069_v2 = vmax.f32 %v1067_v27, %v1068_v59  ;;  %v788_v42 = vpop.permute.xlu0 %787  ;;  %v478_v27 = vmul.f32 %v1237_v55, %v2116_v35 }
 0x45d   :  { %586 = vrot.lane.b32.xlu1 %v575_v61, %s1781_s0  ;;  %721 = vrot.lane.b32.xlu0 %v710_v60, %s1769_s13  ;;  %v1114_v60 = vld [vmem:[%s2456_s9 + $0xd8] sm:$0xff]  ;;  %v1079_v61 = vrot.slane %v1078_v58, 4  ;;  %v1070_v63 = vrot.slane %v1069_v2, 4 }
 0x45e   :  { %v811_v41 = vpop.permute.xlu1 %810 }
 0x45f   :  { %v1071_v14 = vmax.f32 %v1069_v2, %v1070_v63 }
 0x461   :  { %631 = vrot.lane.b32.xlu1 %v620_v47, %s1783_s16  ;;  %629 = vrot.lane.b32.xlu0 %v619_v62, %s1783_s16  ;;  %v1605_v47 = vpack.c.bf16 %v1114_v60, %v1113_v37  ;;  %v1080_v62 = vadd.f32 %v1079_v61, %v1078_v58  ;;  %v1072_v18 = vrot.slane %v1071_v14, 2 }
 0x462   :  { %v2392_v43 = vpop.permute.xlu1 %792 }
 0x463   :  { %1606 = vmatprep.subr.bf16.mxu1 %v1605_v47  ;;  %v1073_v25 = vmax.f32 %v1071_v14, %v1072_v18 }
 0x464   :  { %1608 = vmatpush3.bf16.msra.mxu1 %v1607_v3 }
 0x465   :  { %676 = vrot.lane.b32.xlu1 %v665_v5, %s1767_s12  ;;  %674 = vrot.lane.b32.xlu0 %v664_v8, %s1767_s12  ;;  %v1116_v5 = vld [vmem:[%s2456_s9 + $0xe8] sm:$0xff]  ;;  %v1081_v8 = vrot.slane %v1080_v62, 2  ;;  %v1074_v29 = vrot.slane %v1073_v25, 1 }
 0x466   :  { %v1609_v9 = vpack.c.bf16 %v1116_v5, %v1115_v4  ;;  %v2394_v45 = vpop.permute.xlu1 %820 }
 0x467   :  { %v1082_v16 = vadd.f32 %v1081_v8, %v1080_v62  ;;  %v1075_v31 = vmax.f32 %v1073_v25, %v1074_v29 }
 0x468   :  { %1610 = vmatprep.subr.bf16.mxu1 %v1609_v9 }
 0x469   :  { %584 = vrot.lane.b32.xlu1 %v574_v19, %s1781_s0  ;;  %719 = vrot.lane.b32.xlu0 %v709_v20, %s1769_s13  ;;  %v1117_v19 = vld [vmem:[%s2456_s9 + $0xf0] sm:$0xff]  ;;  %v1118_v20 = vld [vmem:[%s2456_s9 + $0xf8] sm:$0xff]  ;;  %v1083_v21 = vrot.slane %v1082_v16, 1 }
 0x46a   :  { %1612 = vmatpush3.bf16.msra.mxu1 %v1611_v15  ;;  %v1613_v22 = vpack.c.bf16 %v1118_v20, %v1117_v19  ;;  %v1240_v15 = vld [vmem:[%s2451_s4 + $0x78] sm:$0xff] }
 0x46b   :  { %v1084_v28 = vadd.f32 %v1083_v21, %v1082_v16  ;;  %v481_v20 = vmul.f32 %v2120_v36, %v1240_v15  ;;  %v1239_v36 = vld [vmem:[%s2451_s4 + $0x70] sm:$0xff] }
 0x46c   :  { %1614 = vmatprep.subr.bf16.mxu1 %v1613_v22 }
 0x46d   :  { %825 = vperm.xlu1 %1642, %v807_v26   ;;  %766 = vrot.lane.b32.xlu0 %v755_v30, %s1782_s3  ;;  %v1615_v26 = vpack.c.bf16 %v1102_v24, %v1101_v23  ;;  %v1086_v30 = vmul.f32 0.03125, %v1084_v28 }
 0x46f   :  { %1616 = vmatpush3.bf16.msra.mxu1 %v1615_v26  ;;  %1183 = vmatprep.mubr.f32.mxu1 %v1086_v30 }
 0x471   :  { %764 = vrot.lane.b32.xlu1 %v754_v44, %s1782_s3  ;;  %v816_v44 = vpop.permute.xlu0 %815 }
 0x472   :  { %1184 = vmatmul.mubr.f32.vlgmr.msra.gmra.mrb[8].mxu1 %v1075_v31 }
 0x475   :  { %v2396_v46 = vpop.permute.xlu0 %797 }
 0x4b3   :  { %v538_v49 = vpop.permute.xlu1 %537  ;;  %v673_v6 = vpop.permute.xlu0 %672 }
 0x4b4   :  { %v548_v7 = vadd.f32 %v538_v49, %v479_v50 }
 0x4b7   :  { %v583_v51 = vpop.permute.xlu1 %582  ;;  %v718_v52 = vpop.permute.xlu0 %717 }
 0x4b8   :  { %v593_v10 = vadd.f32 %v583_v51, %v548_v7 }
 0x4bb   :  { %v628_v53 = vpop.permute.xlu1 %627  ;;  %v763_v54 = vpop.permute.xlu0 %762 }
 0x4bc   :  { %v638_v11 = vadd.f32 %v628_v53, %v593_v10 }
 0x4be   :  { %v683_v17 = vadd.f32 %v673_v6, %v638_v11  ;;  %v480_v6 = vmul.f32 %v1239_v36, %v2124_v38 }
 0x4bf   :  { %v626_v56 = vpop.permute.xlu1 %625  ;;  %v536_v57 = vpop.permute.xlu0 %535 }
 0x4c0   :  { %v728_v58 = vadd.f32 %v718_v52, %v683_v17  ;;  %v547_v37 = vadd.f32 %v536_v57, %v478_v27 }
 0x4c2   :  { %v773_v59 = vadd.f32 %v763_v54, %v728_v58 }
 0x4c3   :  { %v671_v34 = vpop.permute.xlu1 %670  ;;  %v581_v60 = vpop.permute.xlu0 %580 }
 0x4c4   :  { %v801_v61 = vmul.f32 %v788_v42, %v773_v59  ;;  %v592_v47 = vadd.f32 %v581_v60, %v547_v37 }
 0x4c6   :  { %v829_v0 = vadd.f32 %v816_v44, %v801_v61  ;;  %v637_v1 = vadd.f32 %v626_v56, %v592_v47  ;;  %v981_v61 = vld [vmem:[%s2455_s8 + $0x18] sm:$0xff] }
 0x4c7   :  { %v716_v2 = vpop.permute.xlu1 %715  ;;  %v542_v3 = vpop.permute.xlu0 %541 }
 0x4c8   :  { %v833_v62 = vadd.f32 3.0, %v829_v0  ;;  %v682_v63 = vadd.f32 %v671_v34, %v637_v1  ;;  %v550_v25 = vadd.f32 %v542_v3, %v481_v20 }
 0x4ca   :  { %v837_v4 = vmax.f32 %v833_v62, 0.0  ;;  %v727_v5 = vadd.f32 %v716_v2, %v682_v63 }
 0x4cb   :  { %v761_v8 = vpop.permute.xlu1 %760  ;;  %v540_v9 = vpop.permute.xlu0 %539 }
 0x4cc   :  { %v841_v12 = vmin.f32 %v837_v4, 6.0  ;;  %v772_v13 = vadd.f32 %v761_v8, %v727_v5  ;;  %v549_v7 = vadd.f32 %v540_v9, %v480_v6 }
 0x4ce   :  { %v800_v14 = vmul.f32 %v783_v40, %v772_v13  ;;  %v845_v35 = vmul.f32 %v841_v12, %v829_v0 }
 0x4cf   :  { %v587_v16 = vpop.permute.xlu1 %586  ;;  %v722_v18 = vpop.permute.xlu0 %721 }
 0x4d0   :  { %v828_v19 = vadd.f32 %v811_v41, %v800_v14  ;;  %v1262_v22 = vmul.f32 -0.16666667, %v845_v35  ;;  %v595_v29 = vadd.f32 %v587_v16, %v550_v25 }
 0x4d2   :  { %v832_v21 = vadd.f32 3.0, %v828_v19  ;;  %v858_v30 = vmul.f32 1.442695, %v1262_v22 }
 0x4d3   :  { %v632_v23 = vpop.permute.xlu1 %631  ;;  %v630_v24 = vpop.permute.xlu0 %629 }
 0x4d4   :  { %v836_v26 = vmax.f32 %v832_v21, 0.0  ;;  %v640_v40 = vadd.f32 %v632_v23, %v595_v29  ;;  %1643 = vpow2.f32 %v858_v30 }
 0x4d6   :  { %v840_v28 = vmin.f32 %v836_v26, 6.0 }
 0x4d7   :  { %v677_v31 = vpop.permute.xlu1 %676  ;;  %v675_v32 = vpop.permute.xlu0 %674 }
 0x4d8   :  { %v844_v33 = vmul.f32 %v840_v28, %v828_v19  ;;  %v685_v44 = vadd.f32 %v677_v31, %v640_v40  ;;  %v1199_v28 = vlaneseq }
 0x4da   :  { %v1261_v42 = vmul.f32 -0.16666667, %v844_v33  ;;  %v730_v49 = vadd.f32 %v722_v18, %v685_v44  ;;  %v1200_v29 = vshrl.u32 %v1199_v28, 7 }
 0x4db   :  { %v720_v48 = vpop.permute.xlu0 %719  ;;  %v585_v51 = vpop.permute.xlu1 %584 }
 0x4dc   :  { %v856_v41 = vmul.f32 1.442695, %v1261_v42  ;;  %v594_v53 = vadd.f32 %v585_v51, %v549_v7  ;;  %v1201_v30 = vsub.s32 0, %v1200_v29 }
 0x4de   :  { %1645 = vpow2.f32 %v856_v41  ;;  %v1644_v54 = vpop.eup %1643  ;;  %v639_v11 = vadd.f32 %v630_v24, %v594_v53 }
 0x4df   :  { %v767_v50 = vpop.permute.xlu0 %766  ;;  %v865_v17 = vadd.f32 1.0, %v1644_v54 }
 0x4e0   :  { %v775_v52 = vadd.f32 %v767_v50, %v730_v49  ;;  %v684_v57 = vadd.f32 %v675_v32, %v639_v11  ;;  %v1663_v50 = vld [vmem:[#allocation2 + $0x8] sm:$0xff] }
 0x4e2   :  { %v803_v10 = vmul.f32 %v2396_v46, %v775_v52  ;;  %v729_v59 = vadd.f32 %v720_v48, %v684_v57  ;;  %v980_v46 = vld [vmem:[%s2455_s8 + $0x10] sm:$0xff]  ;;  %s1784_s8 = smov [#allocation8]  }
 0x4e3   :  { %v1581_v62 = vpack.c.bf16 %v981_v61, %v980_v46  ;;  %s1220_s19 = sshll.u32 %s1784_s8, 4  ;;  %v1666_v57 = vld [vmem:[#allocation2 + $0x10] sm:$0xff]  ;;  %s1221_s19 = int_to_ptr.vmem [resolvable:$true] %s1220_s19 }
 0x4e4   :  { %s1733_s20 = scalar_lea.vmem %s1221_s19, 512  ;;  %p1738_p11 = scmp.lt.s32.totalorder %s1221_s19, %s1221_s19 }
 0x4e5   :  { %p1734_p10 = scmp.ne.s32.totalorder %s1221_s19, %s1733_s20  ;;  %p1739_p12 = scmp.lt.s32.totalorder %s1733_s20, %s1733_s20 }
 0x4e7   :  { %p1740_p13 = por %p1739_p12, %p1738_p11 }
 0x4e8   :  { %v1646_v55 = vpop.eup %1645 }
 0x4e9   :  { %v864_v56 = vadd.f32 1.0, %v1646_v55  ;;  %p1741_p0 = pnand %p1740_p13, %p1734_p10 }
 0x4eb   :  { %1647 = vrcp.f32 %v864_v56 }
 0x4ec   :  { %1649 = vrcp.f32 %v865_v17  ;;  %v826_v58 = vpop.permute.xlu1 %825  ;;  %v1665_v17 = vld [vmem:[#allocation2 + $0x18] sm:$0xff] }
 0x4ed   :  { %v831_v27 = vadd.f32 %v826_v58, %v803_v10  ;;  %v1664_v10 = vld [vmem:[#allocation2] sm:$0xff] }
 0x4ef   :  { %v835_v37 = vadd.f32 3.0, %v831_v27 }
 0x4f0   :  { %v765_v38 = vpop.permute.xlu1 %764 }
 0x4f1   :  { %v839_v34 = vmax.f32 %v835_v37, 0.0  ;;  %v774_v60 = vadd.f32 %v765_v38, %v729_v59 }
 0x4f3   :  { %v843_v47 = vmin.f32 %v839_v34, 6.0  ;;  %v802_v0 = vmul.f32 %v2392_v43, %v774_v60 }
 0x4f5   :  { %v1648_v1 = vpop.eup %1647  ;;  %v847_v2 = vmul.f32 %v843_v47, %v831_v27  ;;  %v830_v3 = vadd.f32 %v2394_v45, %v802_v0 }
 0x4f6   :  { %v1650_v63 = vpop.eup %1649  ;;  %1469 = vmatprep.mubr.msk.f32.mxu0 %vm880_vm2, %v1648_v1 }
 0x4f7   :  { %v834_v4 = vadd.f32 3.0, %v830_v3  ;;  %1470 = vmatmul.mubr.msk.f32.vlgmr.msra.gmra.mrb[8].mxu0 %vm880_vm2, %v1650_v63  ;;  %v1264_v5 = vmul.f32 -0.16666667, %v847_v2 }
 0x4f8   :  { %1580 = vmatpush3.bf16.msra.mxu0 %v2389_v39 }
 0x4f9   :  { %v838_v8 = vmax.f32 %v834_v4, 0.0  ;;  %1582 = vmatprep.subr.bf16.mxu0 %v1581_v62  ;;  %v862_v12 = vmul.f32 1.442695, %v1264_v5 }
 0x4fb   :  { %v842_v9 = vmin.f32 %v838_v8, 6.0  ;;  %1651 = vpow2.f32 %v862_v12 }
 0x4fc   :  { %1584 = vmatpush3.bf16.msra.mxu0 %v1581_v62 }
 0x4fd   :  { %v846_v43 = vmul.f32 %v842_v9, %v830_v3 }
 0x4ff   :  { %v1263_v13 = vmul.f32 -0.16666667, %v846_v43 }
 0x501   :  { %v860_v14 = vmul.f32 1.442695, %v1263_v13 }
 0x503   :  { %1653 = vpow2.f32 %v860_v14 }
 0x505   :  { %v1652_v45 = vpop.eup %1651 }
 0x506   :  { %v867_v15 = vadd.f32 1.0, %v1652_v45 }
 0x50d   :  { %v1654_v35 = vpop.eup %1653 }
 0x50e   :  { %v866_v16 = vadd.f32 1.0, %v1654_v35 }
 0x510   :  { %1655 = vrcp.f32 %v866_v16 }
 0x511   :  { %1657 = vrcp.f32 %v867_v15 }
 0x51a   :  { %v1656_v18 = vpop.eup %1655 }
 0x51b   :  { %v1658_v19 = vpop.eup %1657  ;;  %1472 = vmatprep.mubr.msk.f32.mxu0 %vm880_vm2, %v1656_v18 }
 0x51c   :  { %1473 = vmatmul.mubr.msk.f32.gmra.mrb[10].mxu0 %vm880_vm2, %v1658_v19 }
 0x51d   :  { %1483 = vmatprep.mubr.msk.f32.mxu0 %vm880_vm2, %v1648_v1 }
 0x520   :  { %1484 = vmatmul.mubr.msk.f32.vlgmr.msra.gmra.mrb[12].mxu0 %vm880_vm2, %v1650_v63 }
 0x521   :  { %1486 = vmatprep.mubr.msk.f32.mxu0 %vm880_vm2, %v1656_v18 }
 0x524   :  { %1487 = vmatmul.mubr.msk.f32.gmra.mrb[14].mxu0 %vm880_vm2, %v1658_v19 }
 0x545   :  { %v1398_v39 = vpop.f32.mrb[8].mxu1 }
 0x546   :  { %v1399_v20 = vpop.f32.mrb[9].mxu1 }
 0x547   :  { %v1400_v21 = vadd.f32 %v1399_v20, %v1398_v39 }
 0x549   :  { %v1273_v24 = vmul.f32 -1.442695, %v1400_v21 }
 0x54b   :  { %1659 = vpow2.f32 %v1273_v24 }
 0x555   :  { %v1660_v25 = vpop.eup %1659 }
 0x556   :  { %v1192_v26 = vadd.f32 1.0, %v1660_v25 }
 0x558   :  { %1661 = vrcp.f32 %v1192_v26 }
 0x562   :  { %v1662_v31 = vpop.eup %1661 }
 0x563   :  { %v1202_v40 = vrot.slane %v1662_v31, %v1201_v30 }
 0x5ca   :  { %v1471_v22 = vpop.f32.mrb[8].mxu0 }
 0x5cb   :  { %v959_v23 = vpop.f32.mrb[9].mxu0 }
 0x5ef   :  { %v1474_v32 = vpop.f32.mrb[10].mxu0 }
 0x5f0   :  { %v969_v33 = vpop.f32.mrb[11].mxu0 }
 0x5f3   :  { %v1485_v42 = vpop.f32.mrb[12].mxu0 }
 0x5f4   :  { %v1196_v44 = vmul.f32 %v1485_v42, %v1471_v22  ;;  %v1048_v48 = vpop.f32.mrb[13].mxu0 }
 0x5f5   :  { %v1195_v41 = vmul.f32 %v1048_v48, %v959_v23 }
 0x5f6   :  { %v1204_v36 = vmul.f32 %v1202_v40, %v1196_v44 }
 0x5f7   :  { %v1203_v49 = vmul.f32 %v1202_v40, %v1195_v41  ;;  %v1488_v6 = vpop.f32.mrb[14].mxu0 }
 0x5f8   :  { %v1208_v51 = vmul.f32 %v1663_v50, %v1204_v36  ;;  %v1198_v52 = vmul.f32 %v1488_v6, %v1474_v32  ;;  %v1058_v7 = vpop.f32.mrb[15].mxu0 }
 0x5f9   :  { %v1207_v53 = vmul.f32 %v1664_v10, %v1203_v49  ;;  %v1197_v54 = vmul.f32 %v1058_v7, %v969_v33 }
 0x5fa   :  { %1212 = vst [vmem:[#allocation8 + $0x8] sm:$0xff] %v1208_v51  ;;  %v1206_v11 = vmul.f32 %v1202_v40, %v1198_v52 }
 0x5fb   :  { %1211 = vst [vmem:[#allocation8] sm:$0xff] %v1207_v53  ;;  %v1205_v55 = vmul.f32 %v1202_v40, %v1197_v54 }
 0x5fc   :  { %v1210_v56 = vmul.f32 %v1665_v17, %v1206_v11 }
 0x5fd   :  { %v1209_v58 = vmul.f32 %v1666_v57, %v1205_v55 }
 0x5fe   :  { %1214 = vst [vmem:[#allocation8 + $0x18] sm:$0xff] %v1210_v56 }
 0x5ff   :  { %1213 = vst [vmem:[#allocation8 + $0x10] sm:$0xff] %v1209_v58 }
 0x600   :  { %1744 = shalt.err (!%p1741_p0)
}
 0x601   :  { %s1745_s7 = scalar_lea.hbm %s2457_s10, 512 }
 0x602   :  { %p1746_p1 = scmp.ne.s32.totalorder %s2457_s10, %s1745_s7  ;;  %p1749_p2 = scmp.lt.u32.totalorder %s1745_s7, %s2457_s10 }
 0x604   :  { %p1751_p3 = pnand %p1749_p2, %p1746_p1 }
 0x606   :  { %1754 = shalt.err (!%p1751_p3)
}
 0x607   :  { %1226 = dma.vmem_to_hbm [thread:$0]  %s1221_s19, 512, %s2457_s10, [#allocation4], %s1763_s25, %s1763_s25, %s1764_s26  }
 0x608   :  { %1759 = dma.done.wait [#allocation4], 512  }
 0x609   :  { %1760 = vsyncadd [#allocation4], 4294966784 }
 0x60a   :  { %1230 = vsyncpa [#allocation3], 1 }
 0x60b   :  { %1231 = vsyncpa [#allocation6], 1 }
 0x60c   :  { %1232 = vsyncpa [#allocation4], 1 }

</bundles_post_ra>
